<compile_context>
chip_gen: v6e
topology: v6e:2x2x1
jax: 0.10.0
libtpu: 0.0.40
codegen_flags: <defaults>
</compile_context>

<pallas_src>
import functools

import jax
import jax.numpy as jnp
from jax.experimental import pallas as pl
from jax.experimental.pallas import tpu as pltpu


def _round_up(n, m):
    return (n + m - 1) // m * m


def adaptive_mlp_kernel(x_ref, w1_ref, b1_ref, g_ref, w2_ref, b2_ref, o_ref,
                        *, inv_t, batch):
    # fc1 + ReLU  (bf16 MXU inputs, f32 accumulate, f32 elementwise)
    h = jnp.dot(x_ref[...], w1_ref[...], preferred_element_type=jnp.float32)
    h = jnp.maximum(h + b1_ref[...], 0.0)

    # fc2 + ReLU  (re-quantize the activation to bf16 for the MXU)
    y = jnp.dot(h.astype(jnp.bfloat16), w2_ref[...],
                preferred_element_type=jnp.float32)
    y = jnp.maximum(y + b2_ref[...], 0.0)

    # Gumbel perturbation folded with temperature:
    #   (y - log(-log(G))) / t  ==  (y + gum) * inv_t   (inv_t is trace-time)
    gum = -jnp.log(-jnp.log(g_ref[...]))          # (batch_pad, 1), broadcasts
    z = (y + gum) * inv_t

    # Mask padded batch rows out of the dim=0 softmax.
    row = jax.lax.broadcasted_iota(jnp.int32, z.shape, 0)
    z = jnp.where(row < batch, z, -jnp.inf)

    # Temperature softmax over dim=0 (the batch axis), numerically stable.
    z = z - jnp.max(z, axis=0, keepdims=True)
    e = jnp.exp(z)
    denom = jnp.sum(e, axis=0, keepdims=True)
    inv = pl.reciprocal(denom, approx=True)       # EUP vrcp (free slot)
    inv = inv * (2.0 - denom * inv)               # one Newton step -> f32-exact
    o_ref[...] = e * inv


def adaptive_mlp_forward(x, w1, b1, w2, b2, g, temperature, *, tn=128):
    batch, in_dim = x.shape
    hidden = w1.shape[1]
    out_dim = w2.shape[1]

    # TPU-friendly padded shapes: sublane-aligned batch, lane-aligned features.
    bp = _round_up(batch, 8)
    ip = _round_up(in_dim, 128)
    hp = _round_up(hidden, 128)
    op = _round_up(out_dim, tn)

    # Pad inputs (zeros are inert for the matmuls; G padded with 0.5 keeps the
    # Gumbel term finite — padded rows are masked to -inf before the softmax).
    x_p = jnp.zeros((bp, ip), jnp.float32).at[:batch, :in_dim].set(x)
    w1_p = jnp.zeros((ip, hp), jnp.float32).at[:in_dim, :hidden].set(w1)
    b1_p = jnp.zeros((1, hp), jnp.float32).at[:, :hidden].set(b1)
    w2_p = jnp.zeros((hp, op), jnp.float32).at[:hidden, :out_dim].set(w2)
    b2_p = jnp.zeros((1, op), jnp.float32).at[:, :out_dim].set(b2)
    g_p = jnp.full((bp, 1), 0.5, jnp.float32).at[:batch, :].set(g)

    # bf16 at the MXU inputs (halves HBM->VMEM weight traffic).
    x_p = x_p.astype(jnp.bfloat16)
    w1_p = w1_p.astype(jnp.bfloat16)
    w2_p = w2_p.astype(jnp.bfloat16)

    # Rough double-buffered VMEM budget (bytes), clamped to fit v7x's 64 MiB.
    est = (2 * (bp * ip + ip * hp) * 2          # bf16: x, W1
           + 2 * (hp * tn) * 2                  # bf16: W2 tile
           + 2 * (hp + tn + bp) * 4 * 128       # small rows/cols, padded
           + 2 * (bp * tn) * 4                  # output tile
           + (bp * hp + bp * tn) * 4 * 4)       # intermediates + headroom
    vmem_limit = min(max(est + (8 << 20), 16 << 20), 48 << 20)

    n_col_tiles = op // tn
    out_p = pl.pallas_call(
        functools.partial(adaptive_mlp_kernel,
                          inv_t=1.0 / float(temperature),
                          batch=batch),
        out_shape=jax.ShapeDtypeStruct((bp, op), jnp.float32),
        grid=(n_col_tiles,),
        in_specs=[
            pl.BlockSpec((bp, ip), lambda j: (0, 0)),   # x   (resident)
            pl.BlockSpec((ip, hp), lambda j: (0, 0)),   # W1  (resident)
            pl.BlockSpec((1, hp), lambda j: (0, 0)),    # b1  (resident)
            pl.BlockSpec((bp, 1), lambda j: (0, 0)),    # G   (resident)
            pl.BlockSpec((hp, tn), lambda j: (0, j)),   # W2  (column-tiled)
            pl.BlockSpec((1, tn), lambda j: (0, j)),    # b2  (column-tiled)
        ],
        out_specs=pl.BlockSpec((bp, tn), lambda j: (0, j)),
        compiler_params=pltpu.CompilerParams(
            dimension_semantics=("parallel",),
            vmem_limit_bytes=int(vmem_limit)),
    )(x_p, w1_p, b1_p, g_p, w2_p, b2_p)

    # Strip padding.
    return out_p[:batch, :out_dim]


def make_params(key, input_size, hidden_size, output_size):
    """Deterministic kaiming_normal-style init (fan_in, gain=sqrt(2)), zero bias
    (nn.Linear bias default is uniform, but values are synthetic here)."""
    k1, k2 = jax.random.split(key)
    std1 = (2.0 / input_size) ** 0.5
    std2 = (2.0 / hidden_size) ** 0.5
    # Stored as (in, out) so the kernel computes x @ W (== x @ fc.weight.T in torch).
    w1 = jax.random.normal(k1, (input_size, hidden_size), jnp.float32) * std1
    w2 = jax.random.normal(k2, (hidden_size, output_size), jnp.float32) * std2
    b1 = jnp.zeros((1, hidden_size), jnp.float32)
    b2 = jnp.zeros((1, output_size), jnp.float32)
    return w1, b1, w2, b2


if __name__ == "__main__":
    batch, input_size, hidden_size, output_size = 2, 16, 32, 8
    temperature = 0.5

    root = jax.random.PRNGKey(0)
    k_x, k_p, k_g = jax.random.split(root, 3)

    x = jax.random.normal(k_x, (batch, input_size), jnp.float32)
    w1, b1, w2, b2 = make_params(k_p, input_size, hidden_size, output_size)
    # torch.rand(x.shape[0], 1) equivalent — deterministic uniform in (0, 1)
    g = jax.random.uniform(k_g, (batch, 1), jnp.float32,
                           minval=1e-6, maxval=1.0 - 1e-6)

    out = adaptive_mlp_forward(x, w1, b1, w2, b2, g, temperature)
    jax.block_until_ready(out)

    # sanity: softmax over dim=0 => each column sums to 1
    col_sums = jnp.sum(out, axis=0)
    assert out.shape == (batch, output_size)
    assert bool(jnp.allclose(col_sums, 1.0, atol=1e-4))

    print("KERNEL_OK")
</pallas_src>

<mosaic_0001>
module attributes {stable_mosaic.version = 11 : i64} {
  func.func @adaptive_mlp_kernel(%arg0: i32, %arg1: memref<8x128xbf16, #tpu.memory_space<vmem>>, %arg2: memref<128x128xbf16, #tpu.memory_space<vmem>>, %arg3: memref<1x128xf32, #tpu.memory_space<vmem>>, %arg4: memref<8x1xf32, #tpu.memory_space<vmem>>, %arg5: memref<128x128xbf16, #tpu.memory_space<vmem>>, %arg6: memref<1x128xf32, #tpu.memory_space<vmem>>, %arg7: memref<8x128xf32, #tpu.memory_space<vmem>>) attributes {dimension_semantics = [#tpu.dimension_semantics<parallel>], iteration_bounds = array<i64: 1>, scalar_prefetch = 0 : i64, scratch_operands = 0 : i64, tpu.core_type = #tpu.core_type<tc>, window_params = [{pipeline_mode = #tpu.pipeline_mode<synchronous>, transform_indices = @transform_0, window_bounds = array<i64: 8, 128>}, {pipeline_mode = #tpu.pipeline_mode<synchronous>, transform_indices = @transform_1, window_bounds = array<i64: 128, 128>}, {pipeline_mode = #tpu.pipeline_mode<synchronous>, transform_indices = @transform_2, window_bounds = array<i64: 1, 128>}, {pipeline_mode = #tpu.pipeline_mode<synchronous>, transform_indices = @transform_3, window_bounds = array<i64: 8, 1>}, {transform_indices = @transform_4, window_bounds = array<i64: 128, 128>}, {transform_indices = @transform_5, window_bounds = array<i64: 1, 128>}, {transform_indices = @transform_6, window_bounds = array<i64: 8, 128>}]} {
    %c0 = arith.constant 0 : index
    %c0_0 = arith.constant 0 : index
    %0 = vector.load %arg1[%c0, %c0_0] : memref<8x128xbf16, #tpu.memory_space<vmem>>, vector<8x128xbf16>
    %c0_1 = arith.constant 0 : index
    %c0_2 = arith.constant 0 : index
    %1 = vector.load %arg2[%c0_1, %c0_2] : memref<128x128xbf16, #tpu.memory_space<vmem>>, vector<128x128xbf16>
    %cst = arith.constant dense<0.000000e+00> : vector<8x128xf32>
    %2 = tpu.matmul %0, %1, %cst {dimension_numbers = #tpu.dot_dimension_numbers<[1], [0], [0], [1], [0, 0, 1, 1], [], []>} : vector<8x128xbf16>, vector<128x128xbf16>, vector<8x128xf32> -> vector<8x128xf32>
    %c0_3 = arith.constant 0 : index
    %c0_4 = arith.constant 0 : index
    %3 = vector.load %arg3[%c0_3, %c0_4] : memref<1x128xf32, #tpu.memory_space<vmem>>, vector<1x128xf32>
    %4 = vector.broadcast %3 : vector<1x128xf32> to vector<8x128xf32>
    %5 = arith.addf %2, %4 : vector<8x128xf32>
    %cst_5 = arith.constant 0.000000e+00 : f32
    %6 = vector.broadcast %cst_5 : f32 to vector<8x128xf32>
    %7 = arith.maximumf %5, %6 : vector<8x128xf32>
    %8 = arith.truncf %7 : vector<8x128xf32> to vector<8x128xbf16>
    %c0_6 = arith.constant 0 : index
    %c0_7 = arith.constant 0 : index
    %9 = vector.load %arg5[%c0_6, %c0_7] : memref<128x128xbf16, #tpu.memory_space<vmem>>, vector<128x128xbf16>
    %cst_8 = arith.constant dense<0.000000e+00> : vector<8x128xf32>
    %10 = tpu.matmul %8, %9, %cst_8 {dimension_numbers = #tpu.dot_dimension_numbers<[1], [0], [0], [1], [0, 0, 1, 1], [], []>} : vector<8x128xbf16>, vector<128x128xbf16>, vector<8x128xf32> -> vector<8x128xf32>
    %c0_9 = arith.constant 0 : index
    %c0_10 = arith.constant 0 : index
    %11 = vector.load %arg6[%c0_9, %c0_10] : memref<1x128xf32, #tpu.memory_space<vmem>>, vector<1x128xf32>
    %12 = vector.broadcast %11 : vector<1x128xf32> to vector<8x128xf32>
    %13 = arith.addf %10, %12 : vector<8x128xf32>
    %cst_11 = arith.constant 0.000000e+00 : f32
    %14 = vector.broadcast %cst_11 : f32 to vector<8x128xf32>
    %15 = arith.maximumf %13, %14 : vector<8x128xf32>
    %c0_12 = arith.constant 0 : index
    %c0_13 = arith.constant 0 : index
    %16 = vector.load %arg4[%c0_12, %c0_13] : memref<8x1xf32, #tpu.memory_space<vmem>>, vector<8x1xf32>
    %17 = math.log %16 : vector<8x1xf32>
    %cst_14 = arith.constant 0.000000e+00 : f32
    %18 = vector.broadcast %cst_14 : f32 to vector<8x1xf32>
    %19 = arith.subf %18, %17 : vector<8x1xf32>
    %20 = math.log %19 : vector<8x1xf32>
    %cst_15 = arith.constant 0.000000e+00 : f32
    %21 = vector.broadcast %cst_15 : f32 to vector<8x1xf32>
    %22 = arith.subf %21, %20 : vector<8x1xf32>
    %23 = vector.broadcast %22 : vector<8x1xf32> to vector<8x128xf32>
    %24 = arith.addf %15, %23 : vector<8x128xf32>
    %cst_16 = arith.constant 2.000000e+00 : f32
    %25 = vector.broadcast %cst_16 : f32 to vector<8x128xf32>
    %26 = arith.mulf %24, %25 : vector<8x128xf32>
    %27 = tpu.iota {dimensions = array<i32: 0>} : vector<8x128xi32>
    %c2_i32 = arith.constant 2 : i32
    %28 = vector.broadcast %c2_i32 : i32 to vector<8x128xi32>
    %29 = arith.cmpi slt, %27, %28 : vector<8x128xi32>
    %cst_17 = arith.constant 0xFF800000 : f32
    %30 = vector.broadcast %cst_17 : f32 to vector<8x128xf32>
    %31 = arith.select %29, %26, %30 : vector<8x128xi1>, vector<8x128xf32>
    %cst_18 = arith.constant dense<0xFF800000> : vector<128xf32>
    %32 = vector.multi_reduction <maximumf>, %31, %cst_18 [0] : vector<8x128xf32> to vector<128xf32>
    %33 = vector.shape_cast %32 : vector<128xf32> to vector<1x128xf32>
    %34 = vector.broadcast %33 : vector<1x128xf32> to vector<8x128xf32>
    %35 = arith.subf %31, %34 : vector<8x128xf32>
    %36 = math.exp %35 : vector<8x128xf32>
    %cst_19 = arith.constant dense<0.000000e+00> : vector<128xf32>
    %37 = vector.multi_reduction <add>, %36, %cst_19 [0] : vector<8x128xf32> to vector<128xf32>
    %38 = vector.shape_cast %37 : vector<128xf32> to vector<1x128xf32>
    %39 = tpu.reciprocal %38 {approx = true} : vector<1x128xf32> -> vector<1x128xf32>
    %40 = arith.mulf %38, %39 : vector<1x128xf32>
    %cst_20 = arith.constant 2.000000e+00 : f32
    %41 = vector.broadcast %cst_20 : f32 to vector<1x128xf32>
    %42 = arith.subf %41, %40 : vector<1x128xf32>
    %43 = arith.mulf %39, %42 : vector<1x128xf32>
    %44 = vector.broadcast %43 : vector<1x128xf32> to vector<8x128xf32>
    %45 = arith.mulf %36, %44 : vector<8x128xf32>
    %c0_21 = arith.constant 0 : index
    %c0_22 = arith.constant 0 : index
    %46 = vector.load %arg7[%c0_21, %c0_22] : memref<8x128xf32, #tpu.memory_space<vmem>>, vector<8x128xf32>
    tpu.vector_store %arg7[%c0_21, %c0_22], %45 {strides = array<i32>} : memref<8x128xf32, #tpu.memory_space<vmem>>, vector<8x128xf32>,
    return
  }
  func.func @transform_0(%arg0: i32) -> (i32, i32) {
    %c0_i32 = arith.constant 0 : i32
    %c0_i32_0 = arith.constant 0 : i32
    %c0_i32_1 = arith.constant 0 : i32
    return %c0_i32, %c0_i32_0 : i32, i32
  }
  func.func @transform_1(%arg0: i32) -> (i32, i32) {
    %c0_i32 = arith.constant 0 : i32
    %c0_i32_0 = arith.constant 0 : i32
    %c0_i32_1 = arith.constant 0 : i32
    return %c0_i32, %c0_i32_0 : i32, i32
  }
  func.func @transform_2(%arg0: i32) -> (i32, i32) {
    %c0_i32 = arith.constant 0 : i32
    %c0_i32_0 = arith.constant 0 : i32
    %c0_i32_1 = arith.constant 0 : i32
    return %c0_i32, %c0_i32_0 : i32, i32
  }
  func.func @transform_3(%arg0: i32) -> (i32, i32) {
    %c0_i32 = arith.constant 0 : i32
    %c0_i32_0 = arith.constant 0 : i32
    %c0_i32_1 = arith.constant 0 : i32
    return %c0_i32, %c0_i32_0 : i32, i32
  }
  func.func @transform_4(%arg0: i32) -> (i32, i32) {
    %c0_i32 = arith.constant 0 : i32
    %c0_i32_0 = arith.constant 0 : i32
    return %c0_i32, %arg0 : i32, i32
  }
  func.func @transform_5(%arg0: i32) -> (i32, i32) {
    %c0_i32 = arith.constant 0 : i32
    %c0_i32_0 = arith.constant 0 : i32
    return %c0_i32, %arg0 : i32, i32
  }
  func.func @transform_6(%arg0: i32) -> (i32, i32) {
    %c0_i32 = arith.constant 0 : i32
    %c0_i32_0 = arith.constant 0 : i32
    return %c0_i32, %arg0 : i32, i32
  }
}

</mosaic_0001>

<bundles_post_ra>
// kernel: tpu_custom_call.1
= control target key start
LH: loop header
LB: loop body
LE: loop exit
PB: predicated region body
PF: predicated region fallthrough
CT: control target
= control target key end

     0   :  { %11 = vsyncpa [#allocation3], 0  ;;  %s573_s0 = inlined_call_operand.vmem [shape: bf16[8,128], index: 0, kind: input, shape index: {}]   ;;  %s574_s1 = inlined_call_operand.hbm [shape: bf16[128,128], index: 1, kind: input, shape index: {}]   ;;  %s575_s2 = inlined_call_operand.vmem [shape: f32[1,128], index: 2, kind: input, shape index: {}]   ;;  %s576_s3 = inlined_call_operand.vmem [shape: f32[8,1], index: 3, kind: input, shape index: {}]   ;;  %s577_s4 = inlined_call_operand.hbm [shape: bf16[128,128], index: 4, kind: input, shape index: {}]   ;;  %s578_s5 = inlined_call_operand.vmem [shape: f32[1,128], index: 5, kind: input, shape index: {}]   ;;  %s579_s6 = inlined_call_operand.hbm [shape: f32[8,128], index: 6, kind: output, shape index: {}]  }
   0x1   :  { %12 = vsyncpa [#allocation6], 0 }
   0x2   :  { %13 = vsyncpa [#allocation4], 0  ;;  %s509_s21 = smov [#allocation2]  }
   0x3   :  { %s21_s22 = sshll.u32 %s509_s21, 4  ;;  %s22_s22 = int_to_ptr.vmem [resolvable:$true] %s21_s22 }
   0x4   :  { %s451_s23 = scalar_lea.vmem %s22_s22, 1024  ;;  %p456_p1 = scmp.lt.s32.totalorder %s22_s22, %s22_s22 }
   0x5   :  { %p452_p0 = scmp.ne.s32.totalorder %s22_s22, %s451_s23  ;;  %p457_p2 = scmp.lt.s32.totalorder %s451_s23, %s451_s23 }
   0x7   :  { %p458_p3 = por %p457_p2, %p456_p1 }
   0x9   :  { %p459_p4 = pnand %p458_p3, %p452_p0 }
   0xb   :  { %462 = shalt.err (!%p459_p4)
}
   0xc   :  { %s510_s24 = smov 64   ;;  %s511_s25 = smov 4  }
   0xd   :  { %27 = dma.hbm_to_vmem [thread:$0]  %s574_s1, 1024, %s22_s22, [#allocation3], %s510_s24, %s510_s24, %s511_s25  }
   0xe   :  { %s512_s28 = smov [#allocation5]  }
   0xf   :  { %s37_s29 = sshll.u32 %s512_s28, 4  ;;  %s38_s29 = int_to_ptr.vmem [resolvable:$true] %s37_s29 }
  0x10   :  { %s471_s30 = scalar_lea.vmem %s38_s29, 1024  ;;  %p476_p6 = scmp.lt.s32.totalorder %s38_s29, %s38_s29 }
  0x11   :  { %p472_p5 = scmp.ne.s32.totalorder %s38_s29, %s471_s30  ;;  %p477_p7 = scmp.lt.s32.totalorder %s471_s30, %s471_s30 }
  0x13   :  { %p478_p8 = por %p477_p7, %p476_p6 }
  0x15   :  { %p479_p9 = pnand %p478_p8, %p472_p5 }
  0x17   :  { %482 = shalt.err (!%p479_p9)
}
  0x18   :  { %43 = dma.hbm_to_vmem [thread:$0]  %s577_s4, 1024, %s38_s29, [#allocation6], %s510_s24, %s510_s24, %s511_s25  }
  0x19   :  { %503 = dma.done.wait [#allocation3], 1024  }
  0x1a   :  { %504 = vsyncadd [#allocation3], 4294966272 }
  0x1b   :  { %505 = dma.done.wait [#allocation6], 1024  }
  0x1c   :  { %506 = vsyncadd [#allocation6], 4294966272  ;;  %v513_v0 = vmov 0.0   ;;  %vm514_vm0 = vmmov 0   ;;  %v419_v1 = vld [vmem:[#allocation2 + $0x38] sm:$0xff]   ;;  %v420_v2 = vld [vmem:[#allocation2 + $0x30] sm:$0xff]   ;;  %v293_v35 = vlaneseq }
  0x1d   :  { %370 = vmatprep.subr.bf16.mxu0 %v513_v0  ;;  %386 = vmatprep.mubr.msk.bf16.mxu0 %vm514_vm0, %v513_v0  ;;  %v421_v3 = vld [vmem:[#allocation2 + $0x28] sm:$0xff]   ;;  %v427_v4 = vld [vmem:[#allocation5 + $0x38] sm:$0xff]   ;;  %v422_v5 = vld [vmem:[#allocation2 + $0x20] sm:$0xff]   ;;  %v515_v19 = vmov 0  }
  0x1e   :  { %390 = vmatprep.subr.bf16.mxu1 %v513_v0  ;;  %406 = vmatprep.mubr.msk.bf16.mxu1 %vm514_vm0, %v513_v0  ;;  %v428_v6 = vld [vmem:[#allocation5 + $0x30] sm:$0xff]   ;;  %v423_v7 = vld [vmem:[#allocation2 + $0x18] sm:$0xff]   ;;  %v429_v8 = vld [vmem:[#allocation5 + $0x28] sm:$0xff]   ;;  %v294_v39 = vshrl.u32 %v293_v35, 7 }
  0x1f   :  { %371 = vmatpush3.bf16.msra.mxu0 %v419_v1  ;;  %391 = vmatpush3.bf16.msra.mxu1 %v427_v4  ;;  %v424_v9 = vld [vmem:[#allocation2 + $0x10] sm:$0xff]   ;;  %v430_v10 = vld [vmem:[#allocation5 + $0x20] sm:$0xff]   ;;  %v425_v11 = vld [vmem:[#allocation2 + $0x8] sm:$0xff]  }
  0x20   :  { %372 = vmatprep.subr.bf16.mxu0 %v513_v0  ;;  %392 = vmatprep.subr.bf16.mxu1 %v513_v0  ;;  %v431_v12 = vld [vmem:[#allocation5 + $0x18] sm:$0xff]   ;;  %v426_v13 = vld [vmem:[#allocation2] sm:$0xff]   ;;  %v432_v14 = vld [vmem:[#allocation5 + $0x10] sm:$0xff]   ;;  %vm295_vm1 = vcmp.lt.s32.totalorder %v294_v39, 2 }
  0x21   :  { %v53_v15 = vld [vmem:[%s573_s0] sm:$0xf]  ;;  %v433_v16 = vld [vmem:[#allocation5 + $0x8] sm:$0xff]   ;;  %418 = vset.pattern.permute.xlu0 %v515_v19 }
  0x22   :  { %v434_v17 = vld [vmem:[#allocation5] sm:$0xff]  }
  0x23   :  { %373 = vmatpush3.bf16.msra.mxu0 %v420_v2  ;;  %393 = vmatpush3.bf16.msra.mxu1 %v428_v6  ;;  %v279_v18 = vld [vmem:[%s576_s3] sm:$0xff] }
  0x24   :  { %374 = vmatprep.subr.bf16.mxu0 %v513_v0  ;;  %394 = vmatprep.subr.bf16.mxu1 %v513_v0  ;;  %435 = vlog2.f32 %v279_v18  ;;  %v334_v26 = vld [vmem:[%s575_s2] ss:$0 sm:$0xff]  ;;  %s516_s2 = smov [#allocation7]  }
  0x25   :  { %v343_v34 = vld [vmem:[%s578_s5] ss:$0 sm:$0xff]  ;;  %s324_s5 = sshll.u32 %s516_s2, 4  ;;  %s325_s5 = int_to_ptr.vmem [resolvable:$true] %s324_s5 }
  0x26   :  { %s483_s13 = scalar_lea.vmem %s325_s5, 128  ;;  %p488_p11 = scmp.lt.s32.totalorder %s325_s5, %s325_s5 }
  0x27   :  { %375 = vmatpush3.bf16.msra.mxu0 %v421_v3  ;;  %395 = vmatpush3.bf16.msra.mxu1 %v429_v8  ;;  %p484_p10 = scmp.ne.s32.totalorder %s325_s5, %s483_s13  ;;  %p489_p12 = scmp.lt.s32.totalorder %s483_s13, %s483_s13 }
  0x28   :  { %376 = vmatprep.subr.bf16.mxu0 %v513_v0  ;;  %396 = vmatprep.subr.bf16.mxu1 %v513_v0 }
  0x29   :  { %p490_p13 = por %p489_p12, %p488_p11 }
  0x2b   :  { %377 = vmatpush3.bf16.msra.mxu0 %v422_v5  ;;  %397 = vmatpush3.bf16.msra.mxu1 %v430_v10  ;;  %p491_p0 = pnand %p490_p13, %p484_p10 }
  0x2c   :  { %378 = vmatprep.subr.bf16.mxu0 %v513_v0  ;;  %398 = vmatprep.subr.bf16.mxu1 %v513_v0 }
  0x2f   :  { %379 = vmatpush3.bf16.msra.mxu0 %v423_v7  ;;  %399 = vmatpush3.bf16.msra.mxu1 %v431_v12 }
  0x30   :  { %380 = vmatprep.subr.bf16.mxu0 %v513_v0  ;;  %400 = vmatprep.subr.bf16.mxu1 %v513_v0 }
  0x31   :  { %v436_v20 = vpop.eup %435 }
  0x32   :  { %v281_v21 = vmul.f32 0.6931472, %v436_v20 }
  0x33   :  { %381 = vmatpush3.bf16.msra.mxu0 %v424_v9  ;;  %401 = vmatpush3.bf16.msra.mxu1 %v432_v14 }
  0x34   :  { %382 = vmatprep.subr.bf16.mxu0 %v513_v0  ;;  %402 = vmatprep.subr.bf16.mxu1 %v513_v0  ;;  %v282_v22 = vsub.f32 0.0, %v281_v21 }
  0x36   :  { %437 = vlog2.f32 %v282_v22 }
  0x37   :  { %383 = vmatpush3.bf16.msra.mxu0 %v425_v11  ;;  %403 = vmatpush3.bf16.msra.mxu1 %v433_v16 }
  0x38   :  { %384 = vmatprep.subr.bf16.mxu0 %v513_v0  ;;  %404 = vmatprep.subr.bf16.mxu1 %v513_v0 }
  0x3b   :  { %385 = vmatpush3.bf16.msra.mxu0 %v426_v13  ;;  %405 = vmatpush3.bf16.msra.mxu1 %v434_v17 }
  0x3e   :  { %387 = vmatmul.mubr.bf16.vlgmr.msra.gmra.mxu0 %v53_v15 }
  0x43   :  { %v438_v23 = vpop.eup %437 }
  0x44   :  { %v284_v24 = vmul.f32 0.6931472, %v438_v23 }
  0x46   :  { %v285_v25 = vsub.f32 0.0, %v284_v24 }
  0x48   :  { %288 = vperm.xlu0 %418, %v285_v25  }
  0xc3   :  { %v289_v40 = vpop.permute.xlu0 %288 }
  0xfe   :  { %v159_v27 = vpop.f32.mrf.mxu0 }
  0xff   :  { %v160_v28 = vadd.f32 %v334_v26, %v159_v27 }
 0x100   :  { %v388_v29 = vpop.f32.mrf.mxu0 }
 0x101   :  { %v165_v30 = vmax.f32 %v160_v28, 0.0 }
 0x102   :  { %v162_v31 = vpop.f32.mrf.mxu0 }
 0x103   :  { %v166_v32 = vpack.c.bf16 %v165_v30, %v165_v30 }
 0x104   :  { %v389_v33 = vpop.f32.mrf.mxu0 }
 0x105   :  { %407 = vmatmul.mubr.bf16.vlgmr.msra.gmra.mxu1 %v166_v32 }
 0x1c5   :  { %v272_v36 = vpop.f32.mrf.mxu1 }
 0x1c6   :  { %v273_v37 = vadd.f32 %v343_v34, %v272_v36 }
 0x1c7   :  { %v408_v38 = vpop.f32.mrf.mxu1 }
 0x1c8   :  { %v278_v41 = vmax.f32 %v273_v37, 0.0 }
 0x1c9   :  { %v275_v42 = vpop.f32.mrf.mxu1 }
 0x1ca   :  { %v291_v43 = vadd.f32 %v289_v40, %v278_v41 }
 0x1cb   :  { %v409_v44 = vpop.f32.mrf.mxu1 }
 0x1cc   :  { %v292_v45 = vmul.f32 2.0, %v291_v43 }
 0x1ce   :  { %v296_v46 = vsel %vm295_vm1, %v292_v45, -inf }
 0x1cf   :  { %v297_v47 = vrot.slane %v296_v46, 4 }
 0x1d1   :  { %v298_v48 = vmax.f32 %v296_v46, %v297_v47 }
 0x1d3   :  { %v299_v49 = vrot.slane %v298_v48, 2 }
 0x1d5   :  { %v300_v50 = vmax.f32 %v298_v48, %v299_v49 }
 0x1d7   :  { %v301_v51 = vrot.slane %v300_v50, 1 }
 0x1d9   :  { %v302_v52 = vmax.f32 %v300_v50, %v301_v51 }
 0x1db   :  { %v303_v53 = vsub.f32 %v296_v46, %v302_v52 }
 0x1dd   :  { %v304_v54 = vmul.f32 1.442695, %v303_v53 }
 0x1df   :  { %439 = vpow2.f32 %v304_v54 }
 0x1ec   :  { %v440_v55 = vpop.eup %439 }
 0x1ed   :  { %v306_v56 = vrot.slane %v440_v55, 4 }
 0x1ef   :  { %v307_v57 = vadd.f32 %v440_v55, %v306_v56 }
 0x1f1   :  { %v308_v58 = vrot.slane %v307_v57, 2 }
 0x1f3   :  { %v309_v59 = vadd.f32 %v308_v58, %v307_v57 }
 0x1f5   :  { %v310_v60 = vrot.slane %v309_v59, 1 }
 0x1f7   :  { %v311_v61 = vadd.f32 %v310_v60, %v309_v59 }
 0x1f9   :  { %441 = vrcp.f32 %v311_v61 }
 0x206   :  { %v442_v62 = vpop.eup %441 }
 0x207   :  { %v313_v63 = vmul.f32 %v442_v62, %v311_v61 }
 0x209   :  { %v314_v0 = vsub.f32 2.0, %v313_v63 }
 0x20b   :  { %v315_v1 = vmul.f32 %v442_v62, %v314_v0 }
 0x20d   :  { %v316_v2 = vmul.f32 %v440_v55, %v315_v1 }
 0x20f   :  { %317 = vst [vmem:[#allocation7] sm:$0xff] %v316_v2 }
 0x210   :  { %494 = shalt.err (!%p491_p0)
}
 0x211   :  { %327 = dma.vmem_to_hbm [thread:$0]  %s325_s5, 128, %s579_s6, [#allocation4]  }
 0x212   :  { %507 = dma.done.wait [#allocation4], 128  }
 0x213   :  { %508 = vsyncadd [#allocation4], 4294967168 }
 0x214   :  { %331 = vsyncpa [#allocation3], 1 }
 0x215   :  { %332 = vsyncpa [#allocation6], 1 }
 0x216   :  { %333 = vsyncpa [#allocation4], 1 }

</bundles_post_ra>
